<compile_context>
chip_gen: v5e
topology: v5e:2x2
jax: 0.10.0
libtpu: 0.0.40
codegen_flags: <defaults>
</compile_context>

<pallas_src>
import functools

import jax
import jax.numpy as jnp
from jax import lax
from jax.experimental import pallas as pl
from jax.experimental.pallas import tpu as pltpu


LANE = 128   # batch elements per lane row
SUB = 8      # rows per inner chunk -> one dense f32 vreg per stream
H1P = 24     # layer-1 channels (20) padded to a sublane-tile multiple
H2P = 16     # layer-2 channels (10) padded to a sublane-tile multiple

# Row offsets inside the packed (96, 128) parameter table (VMEM resident).
_R_W1 = 0                    # rows  0:24  w1, lane-broadcast (pad rows = 0)
_R_B1 = _R_W1 + H1P          # rows 24:48  b1
_R_B2 = _R_B1 + H1P          # rows 48:64  b2
_R_CB = _R_B2 + H2P          # rows 64:80  fused head biases (mu 0:8, log_var 8:16)
_R_ML = _R_CB + H2P          # rows 80:96  fused (w3, heads) projection matrix
_P_ROWS = _R_ML + H2P        # 96


def _vi_kernel(ptab_ref, w2t_ref, x_ref, eps_ref, z_ref, mu_ref, lv_ref, *,
               block_rows):
    # Small parameter tiles, loaded once per grid step (~14 live vregs).
    w1b = ptab_ref[_R_W1:_R_W1 + H1P, :]     # (24,128)
    b1b = ptab_ref[_R_B1:_R_B1 + H1P, :]     # (24,128)
    b2b = ptab_ref[_R_B2:_R_B2 + H2P, :]     # (16,128)
    cb = ptab_ref[_R_CB:_R_CB + H2P, :]      # (16,128)
    mall = ptab_ref[_R_ML:_R_ML + H2P, :]    # (16,128)
    w2t = w2t_ref[...]                       # (16,24) = W2^T, zero padded

    n_chunks = block_rows // SUB

    def chunk(i, carry):
        r0 = pl.multiple_of(i * SUB, SUB)
        xc = x_ref[pl.ds(r0, SUB), :]        # (8,128) dense, 1 vreg
        ec = eps_ref[pl.ds(r0, SUB), :]      # (8,128)

        # Trunk MLP: per sublane row (128 batch elements on lanes) build h1
        # with channels-on-sublanes on the VPU, then Linear(20,10)+ReLU on the
        # MXU. The padded (16,128) h2 tiles are stacked at tile-aligned
        # sublane offsets (free placement) for the fused final matmul.
        pieces = []
        for rr in range(SUB):
            xr = xc[rr:rr + 1, :]                                  # (1,128)
            h1 = jnp.maximum(xr * w1b + b1b, 0.0)                  # (24,128)
            h2 = jnp.dot(w2t, h1, preferred_element_type=jnp.float32)
            h2 = jnp.maximum(h2 + b2b, 0.0)                        # (16,128)
            pieces.append(h2)
        h2all = jnp.concatenate(pieces, axis=0)                    # (128,128)

        # Fused Linear(10,1) -> {mu head, log_var head}: one MXU matmul whose
        # rows 0:8 are mu and rows 8:16 are log_var, batch rows on sublanes.
        ml = jnp.dot(mall, h2all, preferred_element_type=jnp.float32) + cb
        mu = ml[0:SUB, :]                                          # (8,128)
        lv = ml[SUB:2 * SUB, :]                                    # (8,128)
        # Reparametrization: z = mu + exp(0.5 * log_var) * eps  (EUP exp).
        z = mu + jnp.exp(0.5 * lv) * ec

        # Dense (8,128) unmasked stores for all three outputs.
        z_ref[pl.ds(r0, SUB), :] = z
        mu_ref[pl.ds(r0, SUB), :] = mu
        lv_ref[pl.ds(r0, SUB), :] = lv
        return carry

    lax.fori_loop(0, n_chunks, chunk, 0, unroll=2 if n_chunks >= 2 else 1)


def _round_up(a, b):
    return ((a + b - 1) // b) * b


def pack_params(p):
    """Pack all weights/biases into two small VMEM tables.

    Returns (ptab (96,128), w2t (16,24)). Padded rows/columns are zero so the
    extra channels contribute relu(0) = 0 and never affect the result.
    """
    f32 = jnp.float32
    w1 = p["w1"].reshape(20).astype(f32)
    b1 = p["b1"].reshape(20).astype(f32)
    w2 = p["w2"].astype(f32)                      # (20, 10)
    b2 = p["b2"].reshape(10).astype(f32)
    w3 = p["w3"].reshape(10).astype(f32)
    b3 = p["b3"].reshape(()).astype(f32)
    wmu = p["wmu"].reshape(()).astype(f32)
    bmu = p["bmu"].reshape(()).astype(f32)
    wlv = p["wlv"].reshape(()).astype(f32)
    blv = p["blv"].reshape(()).astype(f32)

    w1b = jnp.zeros((H1P, LANE), f32).at[:20, :].set(w1[:, None])
    b1b = jnp.zeros((H1P, LANE), f32).at[:20, :].set(b1[:, None])
    b2b = jnp.zeros((H2P, LANE), f32).at[:10, :].set(b2[:, None])
    cb = jnp.concatenate([
        jnp.broadcast_to(wmu * b3 + bmu, (SUB, LANE)),
        jnp.broadcast_to(wlv * b3 + blv, (SUB, LANE)),
    ], axis=0).astype(f32)

    # Fused projection: row r picks the r-th stacked h2 block and applies
    # wmu*w3 (rows 0:8 -> mu) or wlv*w3 (rows 8:16 -> log_var).
    mall = jnp.zeros((H2P, SUB * H2P), f32)
    for r in range(SUB):
        mall = mall.at[r, r * H2P:r * H2P + 10].set(wmu * w3)
        mall = mall.at[SUB + r, r * H2P:r * H2P + 10].set(wlv * w3)

    ptab = jnp.concatenate([w1b, b1b, b2b, cb, mall], axis=0)   # (96, 128)
    w2t = jnp.zeros((H2P, H1P), f32).at[:10, :20].set(w2.T)     # (16, 24)
    return ptab, w2t


def vi_forward(x, eps, params, *, target_block_rows=1024):
    """x, eps: (N, 1) or (N,) float32.  Returns (z, mu, log_var), each (N, 1)."""
    x_flat = x.reshape(-1).astype(jnp.float32)
    eps_flat = eps.reshape(-1).astype(jnp.float32)
    N = x_flat.shape[0]

    rows = _round_up(max(pl.cdiv(N, LANE), SUB), SUB)

    # Block sizing: do NOT force a multi-step grid for small N (v5e/v6e have a
    # single TensorCore, so the grid is a serial loop and extra steps only add
    # ~0.35us each).  When the batch is large enough for several blocks, keep
    # the block count even so the two v7x TensorCores stay load balanced, and
    # keep blocks big to amortize per-step overhead (VMEM headroom is large).
    num_blocks = pl.cdiv(rows, target_block_rows)
    if num_blocks > 1 and num_blocks % 2 == 1:
        num_blocks += 1
    block_rows = _round_up(pl.cdiv(rows, num_blocks), SUB)
    rows_pad = num_blocks * block_rows
    n_pad = rows_pad * LANE

    if n_pad == N:
        # Contiguous reshape only: no extra HBM copy.
        x2 = x_flat.reshape(rows_pad, LANE)
        eps2 = eps_flat.reshape(rows_pad, LANE)
    else:
        # Ragged tail: zero-pad (padded lanes compute bias-only garbage that
        # is sliced off below; zero padding keeps exp() finite).
        x2 = jnp.pad(x_flat, (0, n_pad - N)).reshape(rows_pad, LANE)
        eps2 = jnp.pad(eps_flat, (0, n_pad - N)).reshape(rows_pad, LANE)

    ptab, w2t = pack_params(params)

    batch_spec = pl.BlockSpec((block_rows, LANE), lambda i: (i, 0))
    out_sds = jax.ShapeDtypeStruct((rows_pad, LANE), jnp.float32)

    z2, mu2, lv2 = pl.pallas_call(
        functools.partial(_vi_kernel, block_rows=block_rows),
        out_shape=(out_sds, out_sds, out_sds),
        grid=(num_blocks,),
        in_specs=[
            pl.BlockSpec((_P_ROWS, LANE), lambda i: (0, 0)),  # packed params
            pl.BlockSpec((H2P, H1P), lambda i: (0, 0)),       # W2^T tile
            batch_spec,                                       # x
            batch_spec,                                       # eps
        ],
        out_specs=(batch_spec, batch_spec, batch_spec),
        compiler_params=pltpu.CompilerParams(
            dimension_semantics=("parallel",)),
    )(ptab, w2t, x2, eps2)

    def unpack(a):
        if n_pad == N:
            return a.reshape(N, 1)
        return a.reshape(-1)[:N].reshape(N, 1)

    return unpack(z2), unpack(mu2), unpack(lv2)


def init_params(key):
    """PyTorch-style init: U(-1/sqrt(fan_in), 1/sqrt(fan_in)).
    Weights stored (in_features, out_features); biases (out_features,)."""
    def linear(k, fan_in, fan_out):
        kw, kb = jax.random.split(k)
        bound = 1.0 / jnp.sqrt(jnp.float32(fan_in))
        w = jax.random.uniform(kw, (fan_in, fan_out), jnp.float32, -bound, bound)
        b = jax.random.uniform(kb, (fan_out,), jnp.float32, -bound, bound)
        return w, b

    keys = jax.random.split(key, 5)
    w1, b1 = linear(keys[0], 1, 20)
    w2, b2 = linear(keys[1], 20, 10)
    w3, b3 = linear(keys[2], 10, 1)
    wmu, bmu = linear(keys[3], 1, 1)
    wlv, blv = linear(keys[4], 1, 1)
    return dict(w1=w1, b1=b1, w2=w2, b2=b2, w3=w3, b3=b3,
                wmu=wmu, bmu=bmu, wlv=wlv, blv=blv)


def vi_reference(x, eps, p):
    """Pure-JAX reference of the PyTorch forward pass."""
    h1 = jnp.maximum(x @ p["w1"] + p["b1"], 0.0)
    h2 = jnp.maximum(h1 @ p["w2"] + p["b2"], 0.0)
    out = h2 @ p["w3"] + p["b3"]
    mu = out @ p["wmu"] + p["bmu"]
    lv = out @ p["wlv"] + p["blv"]
    z = mu + jnp.exp(0.5 * lv) * eps
    return z, mu, lv


if __name__ == "__main__":
    key = jax.random.PRNGKey(0)
    k_params, k_x, k_eps = jax.random.split(key, 3)

    N = 2048                                   # small batch; single grid step
    params = init_params(k_params)
    x = jax.random.normal(k_x, (N, 1), jnp.float32)
    # eps corresponds to torch.randn_like(sigma) in reparametrize(); it is an
    # explicit input so the kernel stays deterministic and testable.
    eps = jax.random.normal(k_eps, (N, 1), jnp.float32)

    z, mu, log_var = vi_forward(x, eps, params)
    jax.block_until_ready((z, mu, log_var))

    z_ref, mu_ref, lv_ref = vi_reference(x, eps, params)
    assert z.shape == (N, 1) and mu.shape == (N, 1) and log_var.shape == (N, 1)
    assert jnp.allclose(mu, mu_ref, atol=1e-4, rtol=1e-4)
    assert jnp.allclose(log_var, lv_ref, atol=1e-4, rtol=1e-4)
    assert jnp.allclose(z, z_ref, atol=1e-4, rtol=1e-4)

    print("KERNEL_OK")
</pallas_src>

<mosaic_0001>
module attributes {stable_mosaic.version = 11 : i64} {
  func.func @_vi_kernel(%arg0: i32, %arg1: memref<96x128xf32, #tpu.memory_space<vmem>>, %arg2: memref<16x24xf32, #tpu.memory_space<vmem>>, %arg3: memref<16x128xf32, #tpu.memory_space<vmem>>, %arg4: memref<16x128xf32, #tpu.memory_space<vmem>>, %arg5: memref<16x128xf32, #tpu.memory_space<vmem>>, %arg6: memref<16x128xf32, #tpu.memory_space<vmem>>, %arg7: memref<16x128xf32, #tpu.memory_space<vmem>>) attributes {dimension_semantics = [#tpu.dimension_semantics<parallel>], iteration_bounds = array<i64: 1>, scalar_prefetch = 0 : i64, scratch_operands = 0 : i64, tpu.core_type = #tpu.core_type<tc>, window_params = [{pipeline_mode = #tpu.pipeline_mode<synchronous>, transform_indices = @transform_0, window_bounds = array<i64: 96, 128>}, {pipeline_mode = #tpu.pipeline_mode<synchronous>, transform_indices = @transform_1, window_bounds = array<i64: 16, 24>}, {transform_indices = @transform_2, window_bounds = array<i64: 16, 128>}, {transform_indices = @transform_3, window_bounds = array<i64: 16, 128>}, {transform_indices = @transform_4, window_bounds = array<i64: 16, 128>}, {transform_indices = @transform_5, window_bounds = array<i64: 16, 128>}, {transform_indices = @transform_6, window_bounds = array<i64: 16, 128>}]} {
    %c0 = arith.constant 0 : index
    %c0_0 = arith.constant 0 : index
    %0 = vector.load %arg1[%c0, %c0_0] : memref<96x128xf32, #tpu.memory_space<vmem>>, vector<24x128xf32>
    %c24 = arith.constant 24 : index
    %c0_1 = arith.constant 0 : index
    %1 = vector.load %arg1[%c24, %c0_1] : memref<96x128xf32, #tpu.memory_space<vmem>>, vector<24x128xf32>
    %c48 = arith.constant 48 : index
    %c0_2 = arith.constant 0 : index
    %2 = vector.load %arg1[%c48, %c0_2] : memref<96x128xf32, #tpu.memory_space<vmem>>, vector<16x128xf32>
    %c64 = arith.constant 64 : index
    %c0_3 = arith.constant 0 : index
    %3 = vector.load %arg1[%c64, %c0_3] : memref<96x128xf32, #tpu.memory_space<vmem>>, vector<16x128xf32>
    %c80 = arith.constant 80 : index
    %c0_4 = arith.constant 0 : index
    %4 = vector.load %arg1[%c80, %c0_4] : memref<96x128xf32, #tpu.memory_space<vmem>>, vector<16x128xf32>
    %c0_5 = arith.constant 0 : index
    %c0_6 = arith.constant 0 : index
    %5 = vector.load %arg2[%c0_5, %c0_6] : memref<16x24xf32, #tpu.memory_space<vmem>>, vector<16x24xf32>
    %c0_i32 = arith.constant 0 : i32
    %c8_i32 = arith.constant 8 : i32
    %6 = arith.muli %c0_i32, %c8_i32 : i32
    %7 = tpu.assume_multiple %6, 8 : i32
    %8 = arith.index_cast %7 : i32 to index
    %c0_7 = arith.constant 0 : index
    %9 = vector.load %arg3[%8, %c0_7] : memref<16x128xf32, #tpu.memory_space<vmem>>, vector<8x128xf32>
    %10 = arith.index_cast %7 : i32 to index
    %c0_8 = arith.constant 0 : index
    %11 = vector.load %arg4[%10, %c0_8] : memref<16x128xf32, #tpu.memory_space<vmem>>, vector<8x128xf32>
    %12 = vector.extract_strided_slice %9 {offsets = [0, 0], sizes = [1, 128], strides = [1, 1]} : vector<8x128xf32> to vector<1x128xf32>
    %13 = vector.broadcast %12 : vector<1x128xf32> to vector<24x128xf32>
    %14 = arith.mulf %13, %0 : vector<24x128xf32>
    %15 = arith.addf %14, %1 : vector<24x128xf32>
    %cst = arith.constant 0.000000e+00 : f32
    %16 = vector.broadcast %cst : f32 to vector<24x128xf32>
    %17 = arith.maximumf %15, %16 : vector<24x128xf32>
    %cst_9 = arith.constant dense<0.000000e+00> : vector<16x128xf32>
    %18 = tpu.matmul %5, %17, %cst_9 {dimension_numbers = #tpu.dot_dimension_numbers<[1], [0], [0], [1], [0, 0, 1, 1], [], []>} : vector<16x24xf32>, vector<24x128xf32>, vector<16x128xf32> -> vector<16x128xf32>
    %19 = arith.addf %18, %2 : vector<16x128xf32>
    %cst_10 = arith.constant 0.000000e+00 : f32
    %20 = vector.broadcast %cst_10 : f32 to vector<16x128xf32>
    %21 = arith.maximumf %19, %20 : vector<16x128xf32>
    %22 = vector.extract_strided_slice %9 {offsets = [1, 0], sizes = [1, 128], strides = [1, 1]} : vector<8x128xf32> to vector<1x128xf32>
    %23 = vector.broadcast %22 : vector<1x128xf32> to vector<24x128xf32>
    %24 = arith.mulf %23, %0 : vector<24x128xf32>
    %25 = arith.addf %24, %1 : vector<24x128xf32>
    %cst_11 = arith.constant 0.000000e+00 : f32
    %26 = vector.broadcast %cst_11 : f32 to vector<24x128xf32>
    %27 = arith.maximumf %25, %26 : vector<24x128xf32>
    %cst_12 = arith.constant dense<0.000000e+00> : vector<16x128xf32>
    %28 = tpu.matmul %5, %27, %cst_12 {dimension_numbers = #tpu.dot_dimension_numbers<[1], [0], [0], [1], [0, 0, 1, 1], [], []>} : vector<16x24xf32>, vector<24x128xf32>, vector<16x128xf32> -> vector<16x128xf32>
    %29 = arith.addf %28, %2 : vector<16x128xf32>
    %cst_13 = arith.constant 0.000000e+00 : f32
    %30 = vector.broadcast %cst_13 : f32 to vector<16x128xf32>
    %31 = arith.maximumf %29, %30 : vector<16x128xf32>
    %32 = vector.extract_strided_slice %9 {offsets = [2, 0], sizes = [1, 128], strides = [1, 1]} : vector<8x128xf32> to vector<1x128xf32>
    %33 = vector.broadcast %32 : vector<1x128xf32> to vector<24x128xf32>
    %34 = arith.mulf %33, %0 : vector<24x128xf32>
    %35 = arith.addf %34, %1 : vector<24x128xf32>
    %cst_14 = arith.constant 0.000000e+00 : f32
    %36 = vector.broadcast %cst_14 : f32 to vector<24x128xf32>
    %37 = arith.maximumf %35, %36 : vector<24x128xf32>
    %cst_15 = arith.constant dense<0.000000e+00> : vector<16x128xf32>
    %38 = tpu.matmul %5, %37, %cst_15 {dimension_numbers = #tpu.dot_dimension_numbers<[1], [0], [0], [1], [0, 0, 1, 1], [], []>} : vector<16x24xf32>, vector<24x128xf32>, vector<16x128xf32> -> vector<16x128xf32>
    %39 = arith.addf %38, %2 : vector<16x128xf32>
    %cst_16 = arith.constant 0.000000e+00 : f32
    %40 = vector.broadcast %cst_16 : f32 to vector<16x128xf32>
    %41 = arith.maximumf %39, %40 : vector<16x128xf32>
    %42 = vector.extract_strided_slice %9 {offsets = [3, 0], sizes = [1, 128], strides = [1, 1]} : vector<8x128xf32> to vector<1x128xf32>
    %43 = vector.broadcast %42 : vector<1x128xf32> to vector<24x128xf32>
    %44 = arith.mulf %43, %0 : vector<24x128xf32>
    %45 = arith.addf %44, %1 : vector<24x128xf32>
    %cst_17 = arith.constant 0.000000e+00 : f32
    %46 = vector.broadcast %cst_17 : f32 to vector<24x128xf32>
    %47 = arith.maximumf %45, %46 : vector<24x128xf32>
    %cst_18 = arith.constant dense<0.000000e+00> : vector<16x128xf32>
    %48 = tpu.matmul %5, %47, %cst_18 {dimension_numbers = #tpu.dot_dimension_numbers<[1], [0], [0], [1], [0, 0, 1, 1], [], []>} : vector<16x24xf32>, vector<24x128xf32>, vector<16x128xf32> -> vector<16x128xf32>
    %49 = arith.addf %48, %2 : vector<16x128xf32>
    %cst_19 = arith.constant 0.000000e+00 : f32
    %50 = vector.broadcast %cst_19 : f32 to vector<16x128xf32>
    %51 = arith.maximumf %49, %50 : vector<16x128xf32>
    %52 = vector.extract_strided_slice %9 {offsets = [4, 0], sizes = [1, 128], strides = [1, 1]} : vector<8x128xf32> to vector<1x128xf32>
    %53 = vector.broadcast %52 : vector<1x128xf32> to vector<24x128xf32>
    %54 = arith.mulf %53, %0 : vector<24x128xf32>
    %55 = arith.addf %54, %1 : vector<24x128xf32>
    %cst_20 = arith.constant 0.000000e+00 : f32
    %56 = vector.broadcast %cst_20 : f32 to vector<24x128xf32>
    %57 = arith.maximumf %55, %56 : vector<24x128xf32>
    %cst_21 = arith.constant dense<0.000000e+00> : vector<16x128xf32>
    %58 = tpu.matmul %5, %57, %cst_21 {dimension_numbers = #tpu.dot_dimension_numbers<[1], [0], [0], [1], [0, 0, 1, 1], [], []>} : vector<16x24xf32>, vector<24x128xf32>, vector<16x128xf32> -> vector<16x128xf32>
    %59 = arith.addf %58, %2 : vector<16x128xf32>
    %cst_22 = arith.constant 0.000000e+00 : f32
    %60 = vector.broadcast %cst_22 : f32 to vector<16x128xf32>
    %61 = arith.maximumf %59, %60 : vector<16x128xf32>
    %62 = vector.extract_strided_slice %9 {offsets = [5, 0], sizes = [1, 128], strides = [1, 1]} : vector<8x128xf32> to vector<1x128xf32>
    %63 = vector.broadcast %62 : vector<1x128xf32> to vector<24x128xf32>
    %64 = arith.mulf %63, %0 : vector<24x128xf32>
    %65 = arith.addf %64, %1 : vector<24x128xf32>
    %cst_23 = arith.constant 0.000000e+00 : f32
    %66 = vector.broadcast %cst_23 : f32 to vector<24x128xf32>
    %67 = arith.maximumf %65, %66 : vector<24x128xf32>
    %cst_24 = arith.constant dense<0.000000e+00> : vector<16x128xf32>
    %68 = tpu.matmul %5, %67, %cst_24 {dimension_numbers = #tpu.dot_dimension_numbers<[1], [0], [0], [1], [0, 0, 1, 1], [], []>} : vector<16x24xf32>, vector<24x128xf32>, vector<16x128xf32> -> vector<16x128xf32>
    %69 = arith.addf %68, %2 : vector<16x128xf32>
    %cst_25 = arith.constant 0.000000e+00 : f32
    %70 = vector.broadcast %cst_25 : f32 to vector<16x128xf32>
    %71 = arith.maximumf %69, %70 : vector<16x128xf32>
    %72 = vector.extract_strided_slice %9 {offsets = [6, 0], sizes = [1, 128], strides = [1, 1]} : vector<8x128xf32> to vector<1x128xf32>
    %73 = vector.broadcast %72 : vector<1x128xf32> to vector<24x128xf32>
    %74 = arith.mulf %73, %0 : vector<24x128xf32>
    %75 = arith.addf %74, %1 : vector<24x128xf32>
    %cst_26 = arith.constant 0.000000e+00 : f32
    %76 = vector.broadcast %cst_26 : f32 to vector<24x128xf32>
    %77 = arith.maximumf %75, %76 : vector<24x128xf32>
    %cst_27 = arith.constant dense<0.000000e+00> : vector<16x128xf32>
    %78 = tpu.matmul %5, %77, %cst_27 {dimension_numbers = #tpu.dot_dimension_numbers<[1], [0], [0], [1], [0, 0, 1, 1], [], []>} : vector<16x24xf32>, vector<24x128xf32>, vector<16x128xf32> -> vector<16x128xf32>
    %79 = arith.addf %78, %2 : vector<16x128xf32>
    %cst_28 = arith.constant 0.000000e+00 : f32
    %80 = vector.broadcast %cst_28 : f32 to vector<16x128xf32>
    %81 = arith.maximumf %79, %80 : vector<16x128xf32>
    %82 = vector.extract_strided_slice %9 {offsets = [7, 0], sizes = [1, 128], strides = [1, 1]} : vector<8x128xf32> to vector<1x128xf32>
    %83 = vector.broadcast %82 : vector<1x128xf32> to vector<24x128xf32>
    %84 = arith.mulf %83, %0 : vector<24x128xf32>
    %85 = arith.addf %84, %1 : vector<24x128xf32>
    %cst_29 = arith.constant 0.000000e+00 : f32
    %86 = vector.broadcast %cst_29 : f32 to vector<24x128xf32>
    %87 = arith.maximumf %85, %86 : vector<24x128xf32>
    %cst_30 = arith.constant dense<0.000000e+00> : vector<16x128xf32>
    %88 = tpu.matmul %5, %87, %cst_30 {dimension_numbers = #tpu.dot_dimension_numbers<[1], [0], [0], [1], [0, 0, 1, 1], [], []>} : vector<16x24xf32>, vector<24x128xf32>, vector<16x128xf32> -> vector<16x128xf32>
    %89 = arith.addf %88, %2 : vector<16x128xf32>
    %cst_31 = arith.constant 0.000000e+00 : f32
    %90 = vector.broadcast %cst_31 : f32 to vector<16x128xf32>
    %91 = arith.maximumf %89, %90 : vector<16x128xf32>
    %92 = tpu.concatenate %21, %31, %41, %51, %61, %71, %81, %91 in 0 : vector<16x128xf32>, vector<16x128xf32>, vector<16x128xf32>, vector<16x128xf32>, vector<16x128xf32>, vector<16x128xf32>, vector<16x128xf32>, vector<16x128xf32> -> vector<128x128xf32>
    %cst_32 = arith.constant dense<0.000000e+00> : vector<16x128xf32>
    %93 = tpu.matmul %4, %92, %cst_32 {dimension_numbers = #tpu.dot_dimension_numbers<[1], [0], [0], [1], [0, 0, 1, 1], [], []>} : vector<16x128xf32>, vector<128x128xf32>, vector<16x128xf32> -> vector<16x128xf32>
    %94 = arith.addf %93, %3 : vector<16x128xf32>
    %95 = vector.extract_strided_slice %94 {offsets = [0, 0], sizes = [8, 128], strides = [1, 1]} : vector<16x128xf32> to vector<8x128xf32>
    %96 = vector.extract_strided_slice %94 {offsets = [8, 0], sizes = [8, 128], strides = [1, 1]} : vector<16x128xf32> to vector<8x128xf32>
    %cst_33 = arith.constant 5.000000e-01 : f32
    %97 = vector.broadcast %cst_33 : f32 to vector<8x128xf32>
    %98 = arith.mulf %97, %96 : vector<8x128xf32>
    %99 = math.exp %98 : vector<8x128xf32>
    %100 = arith.mulf %99, %11 : vector<8x128xf32>
    %101 = arith.addf %95, %100 : vector<8x128xf32>
    %102 = arith.index_cast %7 : i32 to index
    %c0_34 = arith.constant 0 : index
    %103 = vector.load %arg5[%102, %c0_34] : memref<16x128xf32, #tpu.memory_space<vmem>>, vector<8x128xf32>
    tpu.vector_store %arg5[%102, %c0_34], %101 {strides = array<i32>} : memref<16x128xf32, #tpu.memory_space<vmem>>, vector<8x128xf32>,
    %104 = arith.index_cast %7 : i32 to index
    %c0_35 = arith.constant 0 : index
    %105 = vector.load %arg6[%104, %c0_35] : memref<16x128xf32, #tpu.memory_space<vmem>>, vector<8x128xf32>
    tpu.vector_store %arg6[%104, %c0_35], %95 {strides = array<i32>} : memref<16x128xf32, #tpu.memory_space<vmem>>, vector<8x128xf32>,
    %106 = arith.index_cast %7 : i32 to index
    %c0_36 = arith.constant 0 : index
    %107 = vector.load %arg7[%106, %c0_36] : memref<16x128xf32, #tpu.memory_space<vmem>>, vector<8x128xf32>
    tpu.vector_store %arg7[%106, %c0_36], %96 {strides = array<i32>} : memref<16x128xf32, #tpu.memory_space<vmem>>, vector<8x128xf32>,
    %c1_i32 = arith.constant 1 : i32
    %c8_i32_37 = arith.constant 8 : i32
    %108 = arith.muli %c1_i32, %c8_i32_37 : i32
    %109 = tpu.assume_multiple %108, 8 : i32
    %110 = arith.index_cast %109 : i32 to index
    %c0_38 = arith.constant 0 : index
    %111 = vector.load %arg3[%110, %c0_38] : memref<16x128xf32, #tpu.memory_space<vmem>>, vector<8x128xf32>
    %112 = arith.index_cast %109 : i32 to index
    %c0_39 = arith.constant 0 : index
    %113 = vector.load %arg4[%112, %c0_39] : memref<16x128xf32, #tpu.memory_space<vmem>>, vector<8x128xf32>
    %114 = vector.extract_strided_slice %111 {offsets = [0, 0], sizes = [1, 128], strides = [1, 1]} : vector<8x128xf32> to vector<1x128xf32>
    %115 = vector.broadcast %114 : vector<1x128xf32> to vector<24x128xf32>
    %116 = arith.mulf %115, %0 : vector<24x128xf32>
    %117 = arith.addf %116, %1 : vector<24x128xf32>
    %cst_40 = arith.constant 0.000000e+00 : f32
    %118 = vector.broadcast %cst_40 : f32 to vector<24x128xf32>
    %119 = arith.maximumf %117, %118 : vector<24x128xf32>
    %cst_41 = arith.constant dense<0.000000e+00> : vector<16x128xf32>
    %120 = tpu.matmul %5, %119, %cst_41 {dimension_numbers = #tpu.dot_dimension_numbers<[1], [0], [0], [1], [0, 0, 1, 1], [], []>} : vector<16x24xf32>, vector<24x128xf32>, vector<16x128xf32> -> vector<16x128xf32>
    %121 = arith.addf %120, %2 : vector<16x128xf32>
    %cst_42 = arith.constant 0.000000e+00 : f32
    %122 = vector.broadcast %cst_42 : f32 to vector<16x128xf32>
    %123 = arith.maximumf %121, %122 : vector<16x128xf32>
    %124 = vector.extract_strided_slice %111 {offsets = [1, 0], sizes = [1, 128], strides = [1, 1]} : vector<8x128xf32> to vector<1x128xf32>
    %125 = vector.broadcast %124 : vector<1x128xf32> to vector<24x128xf32>
    %126 = arith.mulf %125, %0 : vector<24x128xf32>
    %127 = arith.addf %126, %1 : vector<24x128xf32>
    %cst_43 = arith.constant 0.000000e+00 : f32
    %128 = vector.broadcast %cst_43 : f32 to vector<24x128xf32>
    %129 = arith.maximumf %127, %128 : vector<24x128xf32>
    %cst_44 = arith.constant dense<0.000000e+00> : vector<16x128xf32>
    %130 = tpu.matmul %5, %129, %cst_44 {dimension_numbers = #tpu.dot_dimension_numbers<[1], [0], [0], [1], [0, 0, 1, 1], [], []>} : vector<16x24xf32>, vector<24x128xf32>, vector<16x128xf32> -> vector<16x128xf32>
    %131 = arith.addf %130, %2 : vector<16x128xf32>
    %cst_45 = arith.constant 0.000000e+00 : f32
    %132 = vector.broadcast %cst_45 : f32 to vector<16x128xf32>
    %133 = arith.maximumf %131, %132 : vector<16x128xf32>
    %134 = vector.extract_strided_slice %111 {offsets = [2, 0], sizes = [1, 128], strides = [1, 1]} : vector<8x128xf32> to vector<1x128xf32>
    %135 = vector.broadcast %134 : vector<1x128xf32> to vector<24x128xf32>
    %136 = arith.mulf %135, %0 : vector<24x128xf32>
    %137 = arith.addf %136, %1 : vector<24x128xf32>
    %cst_46 = arith.constant 0.000000e+00 : f32
    %138 = vector.broadcast %cst_46 : f32 to vector<24x128xf32>
    %139 = arith.maximumf %137, %138 : vector<24x128xf32>
    %cst_47 = arith.constant dense<0.000000e+00> : vector<16x128xf32>
    %140 = tpu.matmul %5, %139, %cst_47 {dimension_numbers = #tpu.dot_dimension_numbers<[1], [0], [0], [1], [0, 0, 1, 1], [], []>} : vector<16x24xf32>, vector<24x128xf32>, vector<16x128xf32> -> vector<16x128xf32>
    %141 = arith.addf %140, %2 : vector<16x128xf32>
    %cst_48 = arith.constant 0.000000e+00 : f32
    %142 = vector.broadcast %cst_48 : f32 to vector<16x128xf32>
    %143 = arith.maximumf %141, %142 : vector<16x128xf32>
    %144 = vector.extract_strided_slice %111 {offsets = [3, 0], sizes = [1, 128], strides = [1, 1]} : vector<8x128xf32> to vector<1x128xf32>
    %145 = vector.broadcast %144 : vector<1x128xf32> to vector<24x128xf32>
    %146 = arith.mulf %145, %0 : vector<24x128xf32>
    %147 = arith.addf %146, %1 : vector<24x128xf32>
    %cst_49 = arith.constant 0.000000e+00 : f32
    %148 = vector.broadcast %cst_49 : f32 to vector<24x128xf32>
    %149 = arith.maximumf %147, %148 : vector<24x128xf32>
    %cst_50 = arith.constant dense<0.000000e+00> : vector<16x128xf32>
    %150 = tpu.matmul %5, %149, %cst_50 {dimension_numbers = #tpu.dot_dimension_numbers<[1], [0], [0], [1], [0, 0, 1, 1], [], []>} : vector<16x24xf32>, vector<24x128xf32>, vector<16x128xf32> -> vector<16x128xf32>
    %151 = arith.addf %150, %2 : vector<16x128xf32>
    %cst_51 = arith.constant 0.000000e+00 : f32
    %152 = vector.broadcast %cst_51 : f32 to vector<16x128xf32>
    %153 = arith.maximumf %151, %152 : vector<16x128xf32>
    %154 = vector.extract_strided_slice %111 {offsets = [4, 0], sizes = [1, 128], strides = [1, 1]} : vector<8x128xf32> to vector<1x128xf32>
    %155 = vector.broadcast %154 : vector<1x128xf32> to vector<24x128xf32>
    %156 = arith.mulf %155, %0 : vector<24x128xf32>
    %157 = arith.addf %156, %1 : vector<24x128xf32>
    %cst_52 = arith.constant 0.000000e+00 : f32
    %158 = vector.broadcast %cst_52 : f32 to vector<24x128xf32>
    %159 = arith.maximumf %157, %158 : vector<24x128xf32>
    %cst_53 = arith.constant dense<0.000000e+00> : vector<16x128xf32>
    %160 = tpu.matmul %5, %159, %cst_53 {dimension_numbers = #tpu.dot_dimension_numbers<[1], [0], [0], [1], [0, 0, 1, 1], [], []>} : vector<16x24xf32>, vector<24x128xf32>, vector<16x128xf32> -> vector<16x128xf32>
    %161 = arith.addf %160, %2 : vector<16x128xf32>
    %cst_54 = arith.constant 0.000000e+00 : f32
    %162 = vector.broadcast %cst_54 : f32 to vector<16x128xf32>
    %163 = arith.maximumf %161, %162 : vector<16x128xf32>
    %164 = vector.extract_strided_slice %111 {offsets = [5, 0], sizes = [1, 128], strides = [1, 1]} : vector<8x128xf32> to vector<1x128xf32>
    %165 = vector.broadcast %164 : vector<1x128xf32> to vector<24x128xf32>
    %166 = arith.mulf %165, %0 : vector<24x128xf32>
    %167 = arith.addf %166, %1 : vector<24x128xf32>
    %cst_55 = arith.constant 0.000000e+00 : f32
    %168 = vector.broadcast %cst_55 : f32 to vector<24x128xf32>
    %169 = arith.maximumf %167, %168 : vector<24x128xf32>
    %cst_56 = arith.constant dense<0.000000e+00> : vector<16x128xf32>
    %170 = tpu.matmul %5, %169, %cst_56 {dimension_numbers = #tpu.dot_dimension_numbers<[1], [0], [0], [1], [0, 0, 1, 1], [], []>} : vector<16x24xf32>, vector<24x128xf32>, vector<16x128xf32> -> vector<16x128xf32>
    %171 = arith.addf %170, %2 : vector<16x128xf32>
    %cst_57 = arith.constant 0.000000e+00 : f32
    %172 = vector.broadcast %cst_57 : f32 to vector<16x128xf32>
    %173 = arith.maximumf %171, %172 : vector<16x128xf32>
    %174 = vector.extract_strided_slice %111 {offsets = [6, 0], sizes = [1, 128], strides = [1, 1]} : vector<8x128xf32> to vector<1x128xf32>
    %175 = vector.broadcast %174 : vector<1x128xf32> to vector<24x128xf32>
    %176 = arith.mulf %175, %0 : vector<24x128xf32>
    %177 = arith.addf %176, %1 : vector<24x128xf32>
    %cst_58 = arith.constant 0.000000e+00 : f32
    %178 = vector.broadcast %cst_58 : f32 to vector<24x128xf32>
    %179 = arith.maximumf %177, %178 : vector<24x128xf32>
    %cst_59 = arith.constant dense<0.000000e+00> : vector<16x128xf32>
    %180 = tpu.matmul %5, %179, %cst_59 {dimension_numbers = #tpu.dot_dimension_numbers<[1], [0], [0], [1], [0, 0, 1, 1], [], []>} : vector<16x24xf32>, vector<24x128xf32>, vector<16x128xf32> -> vector<16x128xf32>
    %181 = arith.addf %180, %2 : vector<16x128xf32>
    %cst_60 = arith.constant 0.000000e+00 : f32
    %182 = vector.broadcast %cst_60 : f32 to vector<16x128xf32>
    %183 = arith.maximumf %181, %182 : vector<16x128xf32>
    %184 = vector.extract_strided_slice %111 {offsets = [7, 0], sizes = [1, 128], strides = [1, 1]} : vector<8x128xf32> to vector<1x128xf32>
    %185 = vector.broadcast %184 : vector<1x128xf32> to vector<24x128xf32>
    %186 = arith.mulf %185, %0 : vector<24x128xf32>
    %187 = arith.addf %186, %1 : vector<24x128xf32>
    %cst_61 = arith.constant 0.000000e+00 : f32
    %188 = vector.broadcast %cst_61 : f32 to vector<24x128xf32>
    %189 = arith.maximumf %187, %188 : vector<24x128xf32>
    %cst_62 = arith.constant dense<0.000000e+00> : vector<16x128xf32>
    %190 = tpu.matmul %5, %189, %cst_62 {dimension_numbers = #tpu.dot_dimension_numbers<[1], [0], [0], [1], [0, 0, 1, 1], [], []>} : vector<16x24xf32>, vector<24x128xf32>, vector<16x128xf32> -> vector<16x128xf32>
    %191 = arith.addf %190, %2 : vector<16x128xf32>
    %cst_63 = arith.constant 0.000000e+00 : f32
    %192 = vector.broadcast %cst_63 : f32 to vector<16x128xf32>
    %193 = arith.maximumf %191, %192 : vector<16x128xf32>
    %194 = tpu.concatenate %123, %133, %143, %153, %163, %173, %183, %193 in 0 : vector<16x128xf32>, vector<16x128xf32>, vector<16x128xf32>, vector<16x128xf32>, vector<16x128xf32>, vector<16x128xf32>, vector<16x128xf32>, vector<16x128xf32> -> vector<128x128xf32>
    %cst_64 = arith.constant dense<0.000000e+00> : vector<16x128xf32>
    %195 = tpu.matmul %4, %194, %cst_64 {dimension_numbers = #tpu.dot_dimension_numbers<[1], [0], [0], [1], [0, 0, 1, 1], [], []>} : vector<16x128xf32>, vector<128x128xf32>, vector<16x128xf32> -> vector<16x128xf32>
    %196 = arith.addf %195, %3 : vector<16x128xf32>
    %197 = vector.extract_strided_slice %196 {offsets = [0, 0], sizes = [8, 128], strides = [1, 1]} : vector<16x128xf32> to vector<8x128xf32>
    %198 = vector.extract_strided_slice %196 {offsets = [8, 0], sizes = [8, 128], strides = [1, 1]} : vector<16x128xf32> to vector<8x128xf32>
    %cst_65 = arith.constant 5.000000e-01 : f32
    %199 = vector.broadcast %cst_65 : f32 to vector<8x128xf32>
    %200 = arith.mulf %199, %198 : vector<8x128xf32>
    %201 = math.exp %200 : vector<8x128xf32>
    %202 = arith.mulf %201, %113 : vector<8x128xf32>
    %203 = arith.addf %197, %202 : vector<8x128xf32>
    %204 = arith.index_cast %109 : i32 to index
    %c0_66 = arith.constant 0 : index
    %205 = vector.load %arg5[%204, %c0_66] : memref<16x128xf32, #tpu.memory_space<vmem>>, vector<8x128xf32>
    tpu.vector_store %arg5[%204, %c0_66], %203 {strides = array<i32>} : memref<16x128xf32, #tpu.memory_space<vmem>>, vector<8x128xf32>,
    %206 = arith.index_cast %109 : i32 to index
    %c0_67 = arith.constant 0 : index
    %207 = vector.load %arg6[%206, %c0_67] : memref<16x128xf32, #tpu.memory_space<vmem>>, vector<8x128xf32>
    tpu.vector_store %arg6[%206, %c0_67], %197 {strides = array<i32>} : memref<16x128xf32, #tpu.memory_space<vmem>>, vector<8x128xf32>,
    %208 = arith.index_cast %109 : i32 to index
    %c0_68 = arith.constant 0 : index
    %209 = vector.load %arg7[%208, %c0_68] : memref<16x128xf32, #tpu.memory_space<vmem>>, vector<8x128xf32>
    tpu.vector_store %arg7[%208, %c0_68], %198 {strides = array<i32>} : memref<16x128xf32, #tpu.memory_space<vmem>>, vector<8x128xf32>,
    %c2_i32 = arith.constant 2 : i32
    return
  }
  func.func @transform_0(%arg0: i32) -> (i32, i32) {
    %c0_i32 = arith.constant 0 : i32
    %c0_i32_0 = arith.constant 0 : i32
    %c0_i32_1 = arith.constant 0 : i32
    return %c0_i32, %c0_i32_0 : i32, i32
  }
  func.func @transform_1(%arg0: i32) -> (i32, i32) {
    %c0_i32 = arith.constant 0 : i32
    %c0_i32_0 = arith.constant 0 : i32
    %c0_i32_1 = arith.constant 0 : i32
    return %c0_i32, %c0_i32_0 : i32, i32
  }
  func.func @transform_2(%arg0: i32) -> (i32, i32) {
    %c0_i32 = arith.constant 0 : i32
    %c0_i32_0 = arith.constant 0 : i32
    return %arg0, %c0_i32 : i32, i32
  }
  func.func @transform_3(%arg0: i32) -> (i32, i32) {
    %c0_i32 = arith.constant 0 : i32
    %c0_i32_0 = arith.constant 0 : i32
    return %arg0, %c0_i32 : i32, i32
  }
  func.func @transform_4(%arg0: i32) -> (i32, i32) {
    %c0_i32 = arith.constant 0 : i32
    %c0_i32_0 = arith.constant 0 : i32
    return %arg0, %c0_i32 : i32, i32
  }
  func.func @transform_5(%arg0: i32) -> (i32, i32) {
    %c0_i32 = arith.constant 0 : i32
    %c0_i32_0 = arith.constant 0 : i32
    return %arg0, %c0_i32 : i32, i32
  }
  func.func @transform_6(%arg0: i32) -> (i32, i32) {
    %c0_i32 = arith.constant 0 : i32
    %c0_i32_0 = arith.constant 0 : i32
    return %arg0, %c0_i32 : i32, i32
  }
}

</mosaic_0001>

<bundles_post_ra>
// kernel: tpu_custom_call.1
= control target key start
LH: loop header
LB: loop body
LE: loop exit
PB: predicated region body
PF: predicated region fallthrough
CT: control target
= control target key end

     0   :  { %12 = vsyncpa [#allocation3], 0  ;;  %s1389_s0 = inlined_call_operand.hbm [shape: f32[96,128], index: 0, kind: input, shape index: {}]   ;;  %s1390_s1 = inlined_call_operand.hbm [shape: f32[16,24], index: 1, kind: input, shape index: {}]   ;;  %s1391_s2 = inlined_call_operand.hbm [shape: f32[16,128], index: 2, kind: input, shape index: {}]   ;;  %s1392_s3 = inlined_call_operand.hbm [shape: f32[16,128], index: 3, kind: input, shape index: {}]   ;;  %s1393_s4 = inlined_call_operand.hbm [shape: f32[16,128], index: 4, kind: output, shape index: {0}]   ;;  %s1394_s5 = inlined_call_operand.hbm [shape: f32[16,128], index: 5, kind: output, shape index: {1}]   ;;  %s1395_s6 = inlined_call_operand.hbm [shape: f32[16,128], index: 6, kind: output, shape index: {2}]  }
   0x1   :  { %13 = vsyncpa [#allocation6], 0 }
   0x2   :  { %14 = vsyncpa [#allocation9], 0 }
   0x3   :  { %15 = vsyncpa [#allocation4], 0 }
   0x4   :  { %16 = vsyncpa [#allocation12], 0  ;;  %s34_s23 = sshll.u32 %s1390_s1, 4  ;;  %s1016_s24 = smov [#allocation5]   ;;  %s35_s23 = int_to_ptr.hbm [resolvable:$true] %s34_s23 }
   0x5   :  { %s36_s25 = sshll.u32 %s1016_s24, 4  ;;  %s21_s28 = sshll.u32 %s1389_s0, 4  ;;  %s37_s25 = int_to_ptr.vmem [resolvable:$true] %s36_s25  ;;  %s22_s28 = int_to_ptr.hbm [resolvable:$true] %s21_s28 }
   0x6   :  { %s1017_s29 = smov 128   ;;  %s1018_s30 = smov 8  }
   0x7   :  { %42 = dma.hbm_to_vmem [thread:$0]  %s35_s23, 256, %s37_s25, [#allocation6], %s1017_s29, %s1017_s29, %s1018_s30  }
   0x8   :  { %s1019_s7 = smov [#allocation2]   ;;  %s47_s1 = sshll.u32 %s1391_s2, 4  ;;  %s48_s1 = int_to_ptr.hbm [resolvable:$true] %s47_s1 }
   0x9   :  { %s23_s8 = sshll.u32 %s1019_s7, 4  ;;  %s60_s12 = sshll.u32 %s1392_s3, 4  ;;  %s24_s8 = int_to_ptr.vmem [resolvable:$true] %s23_s8  ;;  %s61_s12 = int_to_ptr.hbm [resolvable:$true] %s60_s12 }
   0xa   :  { %29 = dma.hbm_to_vmem [thread:$0]  %s22_s28, 1536, %s24_s8, [#allocation3], %s1017_s29, %s1017_s29, %s1018_s30  }
   0xb   :  { %s1020_s13 = smov [#allocation7]   ;;  %s1021_s15 = smov [#allocation8]  }
   0xc   :  { %s49_s14 = sshll.u32 %s1020_s13, 4  ;;  %s62_s2 = sshll.u32 %s1021_s15, 4  ;;  %s50_s14 = int_to_ptr.vmem [resolvable:$true] %s49_s14  ;;  %s63_s2 = int_to_ptr.vmem [resolvable:$true] %s62_s2 }
   0xd   :  { %55 = dma.hbm_to_vmem [thread:$0]  %s48_s1, 256, %s50_s14, [#allocation6], %s1017_s29, %s1017_s29, %s1018_s30  }
   0xe   :  { %68 = dma.hbm_to_vmem [thread:$0]  %s61_s12, 256, %s63_s2, [#allocation9], %s1017_s29, %s1017_s29, %s1018_s30  }
   0xf   :  { %1006 = dma.done.wait [#allocation3], 1536  }
  0x10   :  { %1007 = vsyncadd [#allocation3], 4294965760 }
  0x11   :  { %1008 = dma.done.wait [#allocation6], 512  }
  0x12   :  { %1009 = vsyncadd [#allocation6], 4294966784 }
  0x13   :  { %1010 = dma.done.wait [#allocation9], 256  }
  0x14   :  { %1011 = vsyncadd [#allocation9], 4294967040  ;;  %v1084_v0 = vld [vmem:[#allocation2 + $0x10] sm:$0xff]  ;;  %v1089_v3 = vld [vmem:[#allocation2 + $0x8] sm:$0xff]  ;;  %vm111_vm0 = vcmask 195584   ;;  %s1022_s3 = smov [#allocation11]  }
  0x15   :  { %v1086_v1 = vld [vmem:[#allocation7] sm:$0xff]  ;;  %v1091_v4 = vld [vmem:[#allocation2] sm:$0xff]  ;;  %v1095_v7 = vld [vmem:[#allocation2 + $0x28] sm:$0xff]  ;;  %s754_s16 = sshll.u32 %s1022_s3, 4  ;;  %s756_s19 = sshll.u32 %s1394_s5, 4  ;;  %s755_s16 = int_to_ptr.vmem [resolvable:$true] %s754_s16  ;;  %s757_s19 = int_to_ptr.hbm [resolvable:$true] %s756_s19 }
  0x16   :  { %v178_v2 = vperm.slane %v1086_v1, 2  ;;  %v213_v5 = vperm.slane %v1086_v1, 3  ;;  %v353_v6 = vperm.slane %v1086_v1, 7  ;;  %v1097_v8 = vld [vmem:[#allocation2 + $0x20] sm:$0xff]  ;;  %v1099_v9 = vld [vmem:[#allocation2 + $0x18] sm:$0xff]  ;;  %v143_v10 = vperm.slane %v1086_v1, 1 }
  0x17   :  { %v101_v34 = vperm.slane %v1086_v1, 0  ;;  %v283_v37 = vperm.slane %v1086_v1, 5  ;;  %v318_v38 = vperm.slane %v1086_v1, 6  ;;  %v1126_v39 = vld [vmem:[#allocation5] sm:$0xff]  ;;  %v248_v59 = vperm.slane %v1086_v1, 4  ;;  %s1023_s20 = smov [#allocation13]  }
  0x18   :  { %v181_v11 = vmul.f32 %v178_v2, %v1084_v0  ;;  %v180_v12 = vmul.f32 %v178_v2, %v1089_v3  ;;  %v179_v13 = vmul.f32 %v178_v2, %v1091_v4  ;;  %v216_v14 = vmul.f32 %v213_v5, %v1084_v0  ;;  %s767_s21 = sshll.u32 %s1023_s20, 4  ;;  %s769_s24 = sshll.u32 %s1395_s6, 4  ;;  %s768_s21 = int_to_ptr.vmem [resolvable:$true] %s767_s21  ;;  %s770_s24 = int_to_ptr.hbm [resolvable:$true] %s769_s24 }
  0x19   :  { %v215_v15 = vmul.f32 %v213_v5, %v1089_v3  ;;  %v214_v16 = vmul.f32 %v213_v5, %v1091_v4  ;;  %v356_v17 = vmul.f32 %v353_v6, %v1084_v0  ;;  %v355_v18 = vmul.f32 %v353_v6, %v1089_v3  ;;  %s1024_s5 = smov [#allocation10]   ;;  %s743_s6 = sshll.u32 %s1393_s4, 4  ;;  %s744_s6 = int_to_ptr.hbm [resolvable:$true] %s743_s6 }
  0x1a   :  { %v184_v19 = vadd.f32 %v181_v11, %v1095_v7  ;;  %v183_v20 = vadd.f32 %v180_v12, %v1097_v8  ;;  %v182_v21 = vadd.f32 %v179_v13, %v1099_v9  ;;  %v219_v22 = vadd.f32 %v216_v14, %v1095_v7  ;;  %v1153_v13 = vld [vmem:[#allocation5 + $0x8] sm:$0xff]  ;;  %s741_s25 = sshll.u32 %s1024_s5, 4  ;;  %s742_s25 = int_to_ptr.vmem [resolvable:$true] %s741_s25 }
  0x1b   :  { %v218_v23 = vadd.f32 %v215_v15, %v1097_v8  ;;  %v217_v24 = vadd.f32 %v214_v16, %v1099_v9  ;;  %v359_v29 = vadd.f32 %v356_v17, %v1095_v7  ;;  %v1118_v30 = vadd.f32 %v355_v18, %v1097_v8 }
  0x1c   :  { %v187_v25 = vmax.f32 %v184_v19, 0.0  ;;  %v186_v26 = vmax.f32 %v183_v20, 0.0  ;;  %v185_v27 = vmax.f32 %v182_v21, 0.0  ;;  %v222_v28 = vmax.f32 %v219_v22, 0.0 }
  0x1d   :  { %v221_v31 = vmax.f32 %v218_v23, 0.0  ;;  %v146_v32 = vmul.f32 %v143_v10, %v1084_v0  ;;  %v145_v33 = vmul.f32 %v143_v10, %v1089_v3  ;;  %v220_v35 = vmax.f32 %v217_v24, 0.0 }
  0x1e   :  { %201 = vmatpush.msra.mxu3 %v187_v25  ;;  %v144_v36 = vmul.f32 %v143_v10, %v1091_v4  ;;  %v354_v42 = vmul.f32 %v353_v6, %v1091_v4  ;;  %v104_v43 = vmul.f32 %v101_v34, %v1084_v0  ;;  %v286_v45 = vmul.f32 %v283_v37, %v1084_v0 }
  0x1f   :  { %v149_v40 = vadd.f32 %v146_v32, %v1095_v7  ;;  %v148_v41 = vadd.f32 %v145_v33, %v1097_v8  ;;  %v103_v46 = vmul.f32 %v101_v34, %v1089_v3  ;;  %v321_v47 = vmul.f32 %v318_v38, %v1084_v0  ;;  %v1195_v32 = vld [vmem:[#allocation7 + $0x8] sm:$0xff] }
  0x20   :  { %202 = vmatpush.msra.mxu3 %v186_v26  ;;  %v147_v44 = vadd.f32 %v144_v36, %v1099_v9  ;;  %v362_v48 = vmax.f32 %v359_v29, 0.0  ;;  %v107_v51 = vadd.f32 %v104_v43, %v1095_v7  ;;  %v289_v53 = vadd.f32 %v286_v45, %v1095_v7 }
  0x21   :  { %v152_v49 = vmax.f32 %v149_v40, 0.0  ;;  %v151_v50 = vmax.f32 %v148_v41, 0.0  ;;  %v106_v54 = vadd.f32 %v103_v46, %v1097_v8  ;;  %v324_v55 = vadd.f32 %v321_v47, %v1095_v7 }
  0x22   :  { %203 = vmatpush.msra.mxu3 %v185_v27  ;;  %v150_v52 = vmax.f32 %v147_v44, 0.0  ;;  %v110_v56 = vmax.f32 %v107_v51, 0.0  ;;  %v102_v57 = vmul.f32 %v101_v34, %v1091_v4  ;;  %v320_v58 = vmul.f32 %v318_v38, %v1089_v3 }
  0x23   :  { %797 = vmatmul.msk.f32.vlgmr.msra.gmra.mxu3 %vm111_vm0, %v1126_v39  ;;  %166 = vmatpush.msra.mxu1 %v152_v49  ;;  %v357_v60 = vadd.f32 %v354_v42, %v1099_v9  ;;  %v292_v61 = vmax.f32 %v289_v53, 0.0  ;;  %v327_v62 = vmax.f32 %v324_v55, 0.0  ;;  %v319_v63 = vmul.f32 %v318_v38, %v1091_v4 }
  0x24   :  { %236 = vmatpush.msrb.mxu3 %v222_v28  ;;  %v109_v2 = vmax.f32 %v106_v54, 0.0  ;;  %v105_v5 = vadd.f32 %v102_v57, %v1099_v9  ;;  %v323_v6 = vadd.f32 %v320_v58, %v1097_v8  ;;  %v251_v10 = vmul.f32 %v248_v59, %v1084_v0  ;;  %131 = vmatpush.msra.mxu0 %v110_v56 }
  0x25   :  { %167 = vmatpush.msra.mxu1 %v151_v50  ;;  %341 = vmatpush.msra.mxu2 %v327_v62  ;;  %v322_v11 = vadd.f32 %v319_v63, %v1099_v9  ;;  %v285_v1 = vmul.f32 %v283_v37, %v1089_v3  ;;  %v250_v12 = vmul.f32 %v248_v59, %v1089_v3  ;;  %v361_v14 = vmax.f32 %v1118_v30, 0.0 }
  0x26   :  { %237 = vmatpush.msrb.mxu3 %v221_v31  ;;  %v108_v15 = vmax.f32 %v105_v5, 0.0  ;;  %v326_v16 = vmax.f32 %v323_v6, 0.0  ;;  %v254_v17 = vadd.f32 %v251_v10, %v1095_v7  ;;  %v360_v21 = vmax.f32 %v357_v60, 0.0  ;;  %132 = vmatpush.msra.mxu0 %v109_v2 }
  0x27   :  { %168 = vmatpush.msra.mxu1 %v150_v52  ;;  %v325_v18 = vmax.f32 %v322_v11, 0.0  ;;  %v288_v19 = vadd.f32 %v285_v1, %v1097_v8  ;;  %v253_v20 = vadd.f32 %v250_v12, %v1097_v8  ;;  %v284_v23 = vmul.f32 %v283_v37, %v1091_v4 }
  0x28   :  { %238 = vmatpush.msrb.mxu3 %v220_v35  ;;  %795 = vmatmul.msk.f32.vlgmr.msra.gmra.mxu1 %vm111_vm0, %v1126_v39  ;;  %v257_v22 = vmax.f32 %v254_v17, 0.0  ;;  %v249_v25 = vmul.f32 %v248_v59, %v1091_v4  ;;  %v423_v33 = vperm.slane %v1195_v32, 0  ;;  %v493_v57 = vperm.slane %v1195_v32, 2 }
  0x29   :  { %306 = vmatpush.msrb.mxu1 %v292_v61  ;;  %342 = vmatpush.msra.mxu2 %v326_v16  ;;  %v291_v24 = vmax.f32 %v288_v19, 0.0  ;;  %v256_v26 = vmax.f32 %v253_v20, 0.0  ;;  %v287_v27 = vadd.f32 %v284_v23, %v1099_v9  ;;  %v458_v5 = vperm.slane %v1195_v32, 1 }
  0x2a   :  { %376 = vmatpush.msra.mxu3 %v362_v48  ;;  %133 = vmatpush.msra.mxu0 %v108_v15  ;;  %v252_v28 = vadd.f32 %v249_v25, %v1099_v9  ;;  %v426_v34 = vmul.f32 %v423_v33, %v1084_v0  ;;  %v425_v36 = vmul.f32 %v423_v33, %v1089_v3  ;;  %v528_v48 = vperm.slane %v1195_v32, 3 }
  0x2b   :  { %798 = vmatmul.msk.f32.gmra.mxu3 %vm111_vm0, %v1153_v13  ;;  %793 = vmatmul.msk.f32.vlgmr.msra.gmra.mxu0 %vm111_vm0, %v1126_v39  ;;  %v290_v29 = vmax.f32 %v287_v27, 0.0  ;;  %v424_v40 = vmul.f32 %v423_v33, %v1091_v4  ;;  %v496_v62 = vmul.f32 %v493_v57, %v1084_v0  ;;  %v461_v11 = vmul.f32 %v458_v5, %v1084_v0 }
  0x2c   :  { %377 = vmatpush.msra.mxu3 %v361_v14  ;;  %343 = vmatpush.msra.mxu2 %v325_v18  ;;  %v255_v30 = vmax.f32 %v252_v28, 0.0  ;;  %v429_v35 = vadd.f32 %v426_v34, %v1095_v7  ;;  %v428_v38 = vadd.f32 %v425_v36, %v1097_v8  ;;  %v531_v49 = vmul.f32 %v528_v48, %v1084_v0  ;;  %v1251_v28 = vld [vmem:[#allocation2 + $0x30] sm:$0xff] }
  0x2d   :  { %271 = vmatpush.msrb.mxu0 %v257_v22  ;;  %307 = vmatpush.msrb.mxu1 %v291_v24  ;;  %v427_v43 = vadd.f32 %v424_v40, %v1099_v9  ;;  %v530_v52 = vmul.f32 %v528_v48, %v1089_v3  ;;  %v529_v56 = vmul.f32 %v528_v48, %v1091_v4  ;;  %v668_v16 = vperm.slane %v1195_v32, 7 }
  0x2e   :  { %378 = vmatpush.msra.mxu3 %v360_v21  ;;  %805 = vmatmul.msk.f32.vlgmr.msra.gmra.mxu2 %vm111_vm0, %v1126_v39  ;;  %v432_v37 = vmax.f32 %v429_v35, 0.0  ;;  %v431_v42 = vmax.f32 %v428_v38, 0.0  ;;  %v534_v51 = vadd.f32 %v531_v49, %v1095_v7  ;;  %v499_v2 = vadd.f32 %v496_v62, %v1095_v7 }
  0x2f   :  { %272 = vmatpush.msrb.mxu0 %v256_v26  ;;  %308 = vmatpush.msrb.mxu1 %v290_v29  ;;  %v430_v45 = vmax.f32 %v427_v43, 0.0  ;;  %v533_v54 = vadd.f32 %v530_v52, %v1097_v8  ;;  %v532_v60 = vadd.f32 %v529_v56, %v1099_v9  ;;  %v495_v1 = vmul.f32 %v493_v57, %v1089_v3  ;;  %v1253_v29 = vld [vmem:[#allocation2 + $0x38] sm:$0xff] }
  0x30   :  { %796 = vmatmul.msk.f32.gmra.mxu1 %vm111_vm0, %v1153_v13  ;;  %v537_v53 = vmax.f32 %v534_v51, 0.0  ;;  %v502_v10 = vmax.f32 %v499_v2, 0.0  ;;  %v464_v14 = vadd.f32 %v461_v11, %v1095_v7  ;;  %v460_v19 = vmul.f32 %v458_v5, %v1089_v3 }
  0x31   :  { %273 = vmatpush.msrb.mxu0 %v255_v30  ;;  %446 = vmatpush.msra.mxu1 %v432_v37  ;;  %v536_v58 = vmax.f32 %v533_v54, 0.0  ;;  %v535_v63 = vmax.f32 %v532_v60, 0.0  ;;  %v498_v15 = vadd.f32 %v495_v1, %v1097_v8  ;;  %v494_v21 = vmul.f32 %v493_v57, %v1091_v4 }
  0x32   :  { %v467_v17 = vmax.f32 %v464_v14, 0.0  ;;  %v671_v22 = vmul.f32 %v668_v16, %v1084_v0  ;;  %v463_v24 = vadd.f32 %v460_v19, %v1097_v8  ;;  %v670_v25 = vmul.f32 %v668_v16, %v1089_v3 }
  0x33   :  { %799 = vmatmul.msk.f32.vlgmr.msrb.gmra.mxu3 %vm111_vm0, %v1126_v39  ;;  %794 = vmatmul.msk.f32.gmra.mxu0 %vm111_vm0, %v1153_v13  ;;  %v501_v18 = vmax.f32 %v498_v15, 0.0  ;;  %v497_v26 = vadd.f32 %v494_v21, %v1099_v9  ;;  %v459_v33 = vmul.f32 %v458_v5, %v1091_v4  ;;  %v669_v35 = vmul.f32 %v668_v16, %v1091_v4 }
  0x34   :  { %447 = vmatpush.msra.mxu1 %v431_v42  ;;  %516 = vmatpush.msrb.mxu3 %v502_v10  ;;  %v674_v27 = vadd.f32 %v671_v22, %v1095_v7  ;;  %v466_v30 = vmax.f32 %v463_v24, 0.0  ;;  %v673_v34 = vadd.f32 %v670_v25, %v1097_v8  ;;  %v598_v49 = vperm.slane %v1195_v32, 5 }
  0x35   :  { %481 = vmatpush.msrb.mxu2 %v467_v17  ;;  %v500_v40 = vmax.f32 %v497_v26, 0.0  ;;  %v462_v48 = vadd.f32 %v459_v33, %v1099_v9  ;;  %v672_v52 = vadd.f32 %v669_v35, %v1099_v9  ;;  %v563_v5 = vperm.slane %v1195_v32, 4 }
  0x36   :  { %806 = vmatmul.msk.f32.gmra.mxu2 %vm111_vm0, %v1153_v13  ;;  %448 = vmatpush.msra.mxu1 %v430_v45  ;;  %v677_v42 = vmax.f32 %v674_v27, 0.0  ;;  %v676_v51 = vmax.f32 %v673_v34, 0.0  ;;  %v601_v56 = vmul.f32 %v598_v49, %v1084_v0  ;;  %v600_v10 = vmul.f32 %v598_v49, %v1089_v3 }
  0x37   :  { %517 = vmatpush.msrb.mxu3 %v501_v18  ;;  %482 = vmatpush.msrb.mxu2 %v466_v30  ;;  %v465_v54 = vmax.f32 %v462_v48, 0.0  ;;  %v675_v62 = vmax.f32 %v672_v52, 0.0  ;;  %v566_v1 = vmul.f32 %v563_v5, %v1084_v0  ;;  %v599_v22 = vmul.f32 %v598_v49, %v1091_v4 }
  0x38   :  { %803 = vmatmul.msk.f32.vlgmr.msrb.gmra.mxu1 %vm111_vm0, %v1126_v39  ;;  %v604_v2 = vadd.f32 %v601_v56, %v1095_v7  ;;  %v1328_v56 = vld [vmem:[#allocation2 + $0x50] sm:$0xff] }
  0x39   :  { %551 = vmatpush.msrb.mxu1 %v537_v53  ;;  %518 = vmatpush.msrb.mxu3 %v500_v40  ;;  %v569_v18 = vadd.f32 %v566_v1, %v1095_v7  ;;  %v602_v27 = vadd.f32 %v599_v22, %v1099_v9 }
  0x3a   :  { %483 = vmatpush.msrb.mxu2 %v465_v54 }
  0x3b   :  { %800 = vmatmul.msk.f32.gmra.mxu3 %vm111_vm0, %v1153_v13  ;;  %801 = vmatmul.msk.f32.vlgmr.msrb.gmra.mxu0 %vm111_vm0, %v1126_v39  ;;  %v572_v21 = vmax.f32 %v569_v18, 0.0  ;;  %v605_v35 = vmax.f32 %v602_v27, 0.0 }
  0x3c   :  { %552 = vmatpush.msrb.mxu1 %v536_v58 }
  0x3d   :  { %586 = vmatpush.msra.mxu2 %v572_v21 }
  0x3e   :  { %553 = vmatpush.msrb.mxu1 %v535_v63  ;;  %811 = vmatmul.msk.f32.vlgmr.msrb.gmra.mxu2 %vm111_vm0, %v1126_v39 }
  0x40   :  { %804 = vmatmul.msk.f32.gmra.mxu1 %vm111_vm0, %v1153_v13 }
  0x43   :  { %807 = vmatmul.msk.f32.vlgmr.msra.gmra.mxu3 %vm111_vm0, %v1126_v39  ;;  %802 = vmatmul.msk.f32.gmra.mxu0 %vm111_vm0, %v1153_v13 }
  0x46   :  { %812 = vmatmul.msk.f32.gmra.mxu2 %vm111_vm0, %v1153_v13 }
  0x48   :  { %809 = vmatmul.msk.f32.vlgmr.msra.gmra.mxu1 %vm111_vm0, %v1126_v39 }
  0x49   :  { %691 = vmatpush.msra.mxu1 %v677_v42 }
  0x4b   :  { %808 = vmatmul.msk.f32.gmra.mxu3 %vm111_vm0, %v1153_v13  ;;  %692 = vmatpush.msra.mxu1 %v676_v51 }
  0x4d   :  { %693 = vmatpush.msra.mxu1 %v675_v62 }
  0x50   :  { %810 = vmatmul.msk.f32.gmra.mxu1 %vm111_vm0, %v1153_v13 }
  0x53   :  { %813 = vmatmul.msk.f32.vlgmr.msrb.gmra.mxu3 %vm111_vm0, %v1126_v39 }
  0x58   :  { %815 = vmatmul.msk.f32.vlgmr.msrb.gmra.mxu1 %vm111_vm0, %v1126_v39 }
  0x5b   :  { %814 = vmatmul.msk.f32.gmra.mxu3 %vm111_vm0, %v1153_v13 }
  0x60   :  { %816 = vmatmul.msk.f32.gmra.mxu1 %vm111_vm0, %v1153_v13 }
  0x68   :  { %823 = vmatmul.msk.f32.vlgmr.msra.gmra.mxu1 %vm111_vm0, %v1126_v39 }
  0x70   :  { %824 = vmatmul.msk.f32.gmra.mxu1 %vm111_vm0, %v1153_v13 }
  0xa5   :  { %v1206_v44 = vpop.f32.mrf.mxu1 }
  0xa6   :  { %v1193_v31 = vpop.f32.mrf.mxu3  ;;  %v171_v49 = vadd.f32 %v1206_v44, %v1251_v28 }
  0xa8   :  { %v1212_v47 = vpop.f32.mrf.mxu0 }
  0xad   :  { %v1216_v50 = vpop.f32.mrf.mxu1 }
  0xae   :  { %v1203_v41 = vpop.f32.mrf.mxu3 }
  0xaf   :  { %v209_v40 = vadd.f32 %v1203_v41, %v1253_v29  ;;  %v174_v41 = vadd.f32 %v1216_v50, %v1253_v29  ;;  %v136_v50 = vadd.f32 %v1212_v47, %v1251_v28 }
  0xb0   :  { %v1227_v59 = vpop.f32.mrf.mxu0 }
  0xb1   :  { %v345_v61 = vpop.f32.mrf.mxu2  ;;  %v139_v52 = vadd.f32 %v1227_v59, %v1253_v29 }
  0xb2   :  { %v346_v57 = vadd.f32 %v345_v61, %v1251_v28  ;;  %v607_v61 = vmax.f32 %v604_v2, 0.0 }
  0xb4   :  { %v351_v14 = vmax.f32 %v346_v57, 0.0  ;;  %621 = vmatpush.msra.mxu3 %v607_v61 }
  0xb5   :  { %v1233_v6 = vpop.f32.mrf.mxu1 }
  0xb6   :  { %v1210_v46 = vpop.f32.mrf.mxu3  ;;  %v311_v15 = vadd.f32 %v1233_v6, %v1251_v28  ;;  %v564_v6 = vmul.f32 %v563_v5, %v1091_v4 }
  0xb8   :  { %v1243_v20 = vpop.f32.mrf.mxu0  ;;  %v316_v24 = vmax.f32 %v311_v15, 0.0  ;;  %v567_v33 = vadd.f32 %v564_v6, %v1099_v9 }
  0xb9   :  { %v348_v23 = vpop.f32.mrf.mxu2  ;;  %v276_v25 = vadd.f32 %v1243_v20, %v1251_v28 }
  0xba   :  { %v349_v38 = vadd.f32 %v348_v23, %v1253_v29  ;;  %v565_v23 = vmul.f32 %v563_v5, %v1089_v3 }
  0xbc   :  { %v352_v58 = vmax.f32 %v349_v38, 0.0  ;;  %v568_v30 = vadd.f32 %v565_v23, %v1097_v8  ;;  %v281_v38 = vmax.f32 %v276_v25, 0.0  ;;  %v100_v25 = vld [vmem:[#allocation8] sm:$0xff] }
  0xbd   :  { %v313_v45 = vpop.f32.mrf.mxu1 }
  0xbe   :  { %v1223_v55 = vpop.f32.mrf.mxu3  ;;  %v314_v60 = vadd.f32 %v313_v45, %v1253_v29  ;;  %v571_v20 = vmax.f32 %v568_v30, 0.0  ;;  %v212_v45 = vmax.f32 %v209_v40, 0.0 }
  0xbf   :  { %v244_v34 = vadd.f32 %v1223_v55, %v1253_v29  ;;  %v206_v55 = vadd.f32 %v1193_v31, %v1251_v28  ;;  %v177_v31 = vmax.f32 %v174_v41, 0.0 }
  0xc0   :  { %v278_v11 = vpop.f32.mrf.mxu0  ;;  %v317_v16 = vmax.f32 %v314_v60, 0.0  ;;  %587 = vmatpush.msra.mxu2 %v571_v20 }
  0xc1   :  { %v279_v17 = vadd.f32 %v278_v11, %v1253_v29  ;;  %v247_v42 = vmax.f32 %v244_v34, 0.0  ;;  %v211_v48 = vmax.f32 %v206_v55, 0.0  ;;  %v485_v1 = vpop.f32.mrf.mxu2 }
  0xc3   :  { %v282_v26 = vmax.f32 %v279_v17, 0.0 }
  0xc6   :  { %v380_v12 = vpop.f32.mrf.mxu3 }
  0xc7   :  { %v381_v36 = vadd.f32 %v380_v12, %v1251_v28  ;;  %v603_v12 = vadd.f32 %v600_v10, %v1097_v8 }
  0xc9   :  { %v386_v63 = vmax.f32 %v381_v36, 0.0  ;;  %v606_v19 = vmax.f32 %v603_v12, 0.0  ;;  %v570_v36 = vmax.f32 %v567_v33, 0.0  ;;  %v1345_v12 = vld [vmem:[#allocation2 + $0x40] sm:$0xff]  ;;  %v488_v17 = vpop.f32.mrf.mxu2 }
  0xcb   :  { %622 = vmatpush.msra.mxu3 %v606_v19  ;;  %588 = vmatpush.msra.mxu2 %v570_v36 }
  0xcc   :  { %817 = vmatmul.msk.f32.vlgmr.msra.gmra.mxu2 %vm111_vm0, %v1126_v39 }
  0xcd   :  { %623 = vmatpush.msra.mxu3 %v605_v35 }
  0xce   :  { %v383_v37 = vpop.f32.mrf.mxu3  ;;  %819 = vmatmul.msk.f32.vlgmr.msra.gmra.mxu3 %vm111_vm0, %v1126_v39 }
  0xcf   :  { %v384_v43 = vadd.f32 %v383_v37, %v1253_v29  ;;  %v241_v37 = vadd.f32 %v1210_v46, %v1251_v28  ;;  %v633_v46 = vperm.slane %v1195_v32, 6 }
  0xd1   :  { %v387_v53 = vmax.f32 %v384_v43, 0.0  ;;  %v246_v43 = vmax.f32 %v241_v37, 0.0  ;;  %v636_v51 = vmul.f32 %v633_v46, %v1084_v0  ;;  %v635_v32 = vmul.f32 %v633_v46, %v1089_v3 }
  0xd2   :  { %v634_v54 = vmul.f32 %v633_v46, %v1091_v4  ;;  %v142_v0 = vmax.f32 %v139_v52, 0.0  ;;  %v141_v3 = vmax.f32 %v136_v50, 0.0 }
  0xd3   :  { %388 = vmatpush.msra.mxu0 %v387_v53  ;;  %v176_v53 = vmax.f32 %v171_v49, 0.0  ;;  %v639_v44 = vadd.f32 %v636_v51, %v1095_v7  ;;  %v638_v59 = vadd.f32 %v635_v32, %v1097_v8  ;;  %v1332_v7 = vld [vmem:[#allocation2 + $0x58] sm:$0xff]  ;;  %v1339_v8 = vpop.f32.mrf.mxu1 }
  0xd4   :  { %818 = vmatmul.msk.f32.gmra.mxu2 %vm111_vm0, %v1153_v13 }
  0xd5   :  { %389 = vmatpush.msra.mxu0 %v386_v63  ;;  %v642_v57 = vmax.f32 %v639_v44, 0.0  ;;  %v641_v47 = vmax.f32 %v638_v59, 0.0  ;;  %v489_v44 = vadd.f32 %v488_v17, %v1253_v29 }
  0xd6   :  { %820 = vmatmul.msk.f32.gmra.mxu3 %vm111_vm0, %v1153_v13 }
  0xd7   :  { %390 = vmatpush.msra.mxu0 %v352_v58  ;;  %v637_v58 = vadd.f32 %v634_v54, %v1099_v9 }
  0xd9   :  { %391 = vmatpush.msra.mxu0 %v351_v14  ;;  %v640_v4 = vmax.f32 %v637_v58, 0.0 }
  0xdb   :  { %392 = vmatpush.msra.mxu0 %v317_v16  ;;  %v1341_v9 = vpop.f32.mrf.mxu1  ;;  %v1348_v16 = vld [vmem:[#allocation2 + $0x48] sm:$0xff] }
  0xdc   :  { %v454_v59 = vadd.f32 %v1341_v9, %v1253_v29 }
  0xdd   :  { %393 = vmatpush.msra.mxu0 %v316_v24 }
  0xdf   :  { %394 = vmatpush.msra.mxu0 %v282_v26 }
  0xe1   :  { %395 = vmatpush.msra.mxu0 %v281_v38 }
  0xe3   :  { %396 = vmatpush.msra.mxu0 %v247_v42  ;;  %v555_v60 = vpop.f32.mrf.mxu1 }
  0xe4   :  { %v556_v49 = vadd.f32 %v555_v60, %v1251_v28  ;;  %v422_v60 = vld [vmem:[#allocation8 + $0x8] sm:$0xff] }
  0xe5   :  { %397 = vmatpush.msra.mxu0 %v246_v43 }
  0xe6   :  { %v561_v32 = vmax.f32 %v556_v49, 0.0 }
  0xe7   :  { %398 = vmatpush.msra.mxu0 %v212_v45 }
  0xe9   :  { %399 = vmatpush.msra.mxu0 %v211_v48 }
  0xeb   :  { %400 = vmatpush.msra.mxu0 %v177_v31  ;;  %v558_v62 = vpop.f32.mrf.mxu1 }
  0xec   :  { %v559_v48 = vadd.f32 %v558_v62, %v1253_v29 }
  0xed   :  { %401 = vmatpush.msra.mxu0 %v176_v53 }
  0xee   :  { %v562_v31 = vmax.f32 %v559_v48, 0.0 }
  0xef   :  { %402 = vmatpush.msra.mxu0 %v142_v0  ;;  %v486_v0 = vadd.f32 %v485_v1, %v1251_v28 }
  0xf1   :  { %403 = vmatpush.msra.mxu0 %v141_v3  ;;  %v492_v3 = vmax.f32 %v489_v44, 0.0  ;;  %v491_v58 = vmax.f32 %v486_v0, 0.0 }
  0xf2   :  { %404 = vmatmul.f32.vlgmr.msra.gmra.mxu0 %v1328_v56 }
  0xf3   :  { %656 = vmatpush.msrb.mxu0 %v642_v57  ;;  %v695_v63 = vpop.f32.mrf.mxu1  ;;  %v451_v57 = vadd.f32 %v1339_v8, %v1251_v28 }
  0xf4   :  { %v696_v2 = vadd.f32 %v695_v63, %v1251_v28 }
  0xf5   :  { %657 = vmatpush.msrb.mxu0 %v641_v47  ;;  %v457_v47 = vmax.f32 %v454_v59, 0.0 }
  0xf6   :  { %v701_v11 = vmax.f32 %v696_v2, 0.0 }
  0xf7   :  { %658 = vmatpush.msrb.mxu0 %v640_v4  ;;  %v456_v4 = vmax.f32 %v451_v57, 0.0 }
  0xfa   :  { %407 = vmatmul.f32.gmra.mxu0 %v1332_v7 }
  0xfb   :  { %v698_v5 = vpop.f32.mrf.mxu1 }
  0xfc   :  { %v699_v10 = vadd.f32 %v698_v5, %v1253_v29 }
  0xfe   :  { %v702_v61 = vmax.f32 %v699_v10, 0.0 }
 0x100   :  { %703 = vmatpush.msrb.mxu2 %v702_v61 }
 0x102   :  { %821 = vmatmul.msk.f32.vlgmr.msrb.gmra.mxu0 %vm111_vm0, %v1126_v39  ;;  %704 = vmatpush.msrb.mxu2 %v701_v11  ;;  %v520_v39 = vpop.f32.mrf.mxu3 }
 0x103   :  { %v521_v53 = vadd.f32 %v520_v39, %v1251_v28 }
 0x105   :  { %v526_v54 = vmax.f32 %v521_v53, 0.0 }
 0x10a   :  { %822 = vmatmul.msk.f32.gmra.mxu0 %vm111_vm0, %v1153_v13  ;;  %v523_v15 = vpop.f32.mrf.mxu3 }
 0x10b   :  { %v524_v52 = vadd.f32 %v523_v15, %v1253_v29 }
 0x10d   :  { %v527_v50 = vmax.f32 %v524_v52, 0.0 }
 0x14f   :  { %v590_v24 = vpop.f32.mrf.mxu2 }
 0x150   :  { %v591_v45 = vadd.f32 %v590_v24, %v1251_v28 }
 0x151   :  { %v625_v22 = vpop.f32.mrf.mxu3 }
 0x152   :  { %v626_v42 = vadd.f32 %v625_v22, %v1251_v28  ;;  %v596_v51 = vmax.f32 %v591_v45, 0.0 }
 0x154   :  { %v631_v46 = vmax.f32 %v626_v42, 0.0 }
 0x157   :  { %v593_v37 = vpop.f32.mrf.mxu2 }
 0x158   :  { %v594_v43 = vadd.f32 %v593_v37, %v1253_v29 }
 0x159   :  { %v628_v27 = vpop.f32.mrf.mxu3 }
 0x15a   :  { %v629_v36 = vadd.f32 %v628_v27, %v1253_v29  ;;  %v597_v41 = vmax.f32 %v594_v43, 0.0 }
 0x15c   :  { %v632_v55 = vmax.f32 %v629_v36, 0.0 }
 0x16f   :  { %v405_v13 = vpop.f32.mrf.mxu0 }
 0x170   :  { %v406_v14 = vadd.f32 %v405_v13, %v1345_v12 }
 0x172   :  { %417 = vst [vmem:[#allocation11] sm:$0xff] %v406_v14 }
 0x177   :  { %v408_v18 = vpop.f32.mrf.mxu0 }
 0x178   :  { %v409_v19 = vadd.f32 %v408_v18, %v1348_v16 }
 0x17a   :  { %v411_v21 = vmul.f32 0.5, %v409_v19  ;;  %418 = vst [vmem:[#allocation13] sm:$0xff] %v409_v19 }
 0x17c   :  { %v412_v23 = vmul.f32 1.442695, %v411_v21 }
 0x17e   :  { %834 = vpow2.f32 %v412_v23 }
 0x17f   :  { %v660_v6 = vpop.f32.mrf.mxu0 }
 0x180   :  { %v661_v35 = vadd.f32 %v660_v6, %v1251_v28 }
 0x182   :  { %v666_v40 = vmax.f32 %v661_v35, 0.0 }
 0x184   :  { %v835_v26 = vpop.eup %834 }
 0x185   :  { %v414_v30 = vmul.f32 %v835_v26, %v100_v25 }
 0x187   :  { %v663_v33 = vpop.f32.mrf.mxu0  ;;  %v415_v34 = vadd.f32 %v414_v30, %v406_v14 }
 0x188   :  { %v664_v20 = vadd.f32 %v663_v33, %v1253_v29 }
 0x189   :  { %416 = vst [vmem:[#allocation10] sm:$0xff] %v415_v34 }
 0x18a   :  { %v667_v38 = vmax.f32 %v664_v20, 0.0 }
 0x18c   :  { %705 = vmatpush.msrb.mxu2 %v667_v38 }
 0x18e   :  { %706 = vmatpush.msrb.mxu2 %v666_v40 }
 0x190   :  { %707 = vmatpush.msrb.mxu2 %v632_v55 }
 0x192   :  { %708 = vmatpush.msrb.mxu2 %v631_v46 }
 0x194   :  { %709 = vmatpush.msrb.mxu2 %v597_v41 }
 0x196   :  { %710 = vmatpush.msrb.mxu2 %v596_v51 }
 0x198   :  { %711 = vmatpush.msrb.mxu2 %v562_v31 }
 0x19a   :  { %712 = vmatpush.msrb.mxu2 %v561_v32 }
 0x19c   :  { %713 = vmatpush.msrb.mxu2 %v527_v50 }
 0x19e   :  { %714 = vmatpush.msrb.mxu2 %v526_v54 }
 0x1a0   :  { %715 = vmatpush.msrb.mxu2 %v492_v3 }
 0x1a2   :  { %716 = vmatpush.msrb.mxu2 %v491_v58 }
 0x1a4   :  { %717 = vmatpush.msrb.mxu2 %v457_v47 }
 0x1a6   :  { %718 = vmatpush.msrb.mxu2 %v456_v4 }
 0x1a7   :  { %719 = vmatmul.f32.vlgmr.msrb.gmra.mxu2 %v1328_v56 }
 0x1af   :  { %722 = vmatmul.f32.gmra.mxu2 %v1332_v7 }
 0x22a   :  { %v720_v29 = vpop.f32.mrf.mxu2 }
 0x22b   :  { %v721_v28 = vadd.f32 %v720_v29, %v1345_v12 }
 0x22d   :  { %734 = vst [vmem:[#allocation11 + $0x8] sm:$0xff] %v721_v28 }
 0x22e   :  { %762 = dma.vmem_to_hbm [thread:$0]  %s755_s16, 256, %s757_s19, [#allocation12], %s1017_s29, %s1017_s29, %s1018_s30  }
 0x232   :  { %v723_v56 = vpop.f32.mrf.mxu2 }
 0x233   :  { %v724_v7 = vadd.f32 %v723_v56, %v1348_v16 }
 0x235   :  { %v726_v8 = vmul.f32 0.5, %v724_v7  ;;  %736 = vst [vmem:[#allocation13 + $0x8] sm:$0xff] %v724_v7 }
 0x236   :  { %775 = dma.vmem_to_hbm [thread:$0]  %s768_s21, 256, %s770_s24, [#allocation12], %s1017_s29, %s1017_s29, %s1018_s30  }
 0x237   :  { %v727_v9 = vmul.f32 1.442695, %v726_v8 }
 0x239   :  { %836 = vpow2.f32 %v727_v9 }
 0x23f   :  { %v837_v62 = vpop.eup %836 }
 0x240   :  { %v729_v63 = vmul.f32 %v837_v62, %v422_v60 }
 0x242   :  { %v730_v2 = vadd.f32 %v729_v63, %v721_v28 }
 0x244   :  { %732 = vst [vmem:[#allocation10 + $0x8] sm:$0xff] %v730_v2 }
 0x245   :  { %749 = dma.vmem_to_hbm [thread:$0]  %s742_s25, 256, %s744_s6, [#allocation4], %s1017_s29, %s1017_s29, %s1018_s30  }
 0x246   :  { %1012 = dma.done.wait [#allocation4], 256  }
 0x247   :  { %1013 = vsyncadd [#allocation4], 4294967040 }
 0x248   :  { %1014 = dma.done.wait [#allocation12], 512  }
 0x249   :  { %1015 = vsyncadd [#allocation12], 4294966784 }
 0x24a   :  { %788 = vsyncpa [#allocation3], 1 }
 0x24b   :  { %789 = vsyncpa [#allocation6], 1 }
 0x24c   :  { %790 = vsyncpa [#allocation9], 1 }
 0x24d   :  { %791 = vsyncpa [#allocation4], 1 }
 0x24e   :  { %792 = vsyncpa [#allocation12], 1 }

</bundles_post_ra>
